<compile_context>
chip_gen: v6e
topology: v6e:2x2x1
jax: 0.10.0
libtpu: 0.0.40
codegen_flags: <defaults>
</compile_context>

<pallas_src>
import functools

import jax
import jax.numpy as jnp
from jax.experimental import pallas as pl
from jax.experimental.pallas import tpu as pltpu

# Small, module-consistent shapes.
BLOCK_SIZE = 8                       # T (sequence length)
EMBD_SIZE = 32                       # E
NUM_HEADS = 4                        # head_size = 8
HEAD_SIZE = EMBD_SIZE // NUM_HEADS
HIDDEN = 4 * EMBD_SIZE
BATCH = 2
LN_EPS = 1e-5
NEG_BIG = -1e30                      # finite "−inf" (safe even for masked rows)


def _layernorm(v, g, b):
    mu = jnp.mean(v, axis=-1, keepdims=True)
    var = jnp.mean((v - mu) ** 2, axis=-1, keepdims=True)
    return (v - mu) * jax.lax.rsqrt(var + LN_EPS) * g + b


def attention_block_kernel(
    x_ref,                           # (B*T, E) flattened activations
    g1_ref, be1_ref,                 # (1, E)   ln1 gamma/beta
    wqkv_ref,                        # (H, E, 3*hs) fused head-major QKV weight
    wp_ref,                          # (H, hs, E)   per-head out-proj slices
    bp_ref,                          # (1, E)
    g2_ref, be2_ref,                 # (1, E)   ln2 gamma/beta
    w1_ref, bf1_ref,                 # (E, 4E), (1, 4E)
    w2_ref, bf2_ref,                 # (4E, E), (1, E)
    o_ref,                           # (B*T, E)
    *, batch, seq_len, num_heads,
):
    x = x_ref[...]                   # (N, E) with N = B*T
    n, e = x.shape
    hs = e // num_heads
    scale = hs ** (-0.5)

    # --- ln1 + causal multi-head attention + residual --------------------
    h = _layernorm(x, g1_ref[...], be1_ref[...])

    # Fused QKV, one batched dot_general over heads: (H,N,E)@(H,E,3hs)->(H,N,3hs)
    hb = jnp.broadcast_to(h[None, :, :], (num_heads, n, e))
    qkv = jnp.einsum('hne,hef->hnf', hb, wqkv_ref[...],
                     preferred_element_type=jnp.float32)
    q = qkv[:, :, 0:hs] * scale      # scale folded into q once
    k = qkv[:, :, hs:2 * hs]
    v = qkv[:, :, 2 * hs:3 * hs]

    # Block-diagonal (per-batch) causal additive mask over the N global rows.
    r = jax.lax.broadcasted_iota(jnp.int32, (n, n), 0)
    c = jax.lax.broadcasted_iota(jnp.int32, (n, n), 1)
    causal = c <= r
    same_batch = functools.reduce(
        jnp.logical_or,
        [(r >= b * seq_len) & (r < (b + 1) * seq_len) &
         (c >= b * seq_len) & (c < (b + 1) * seq_len)
         for b in range(batch)])
    bias = jnp.where(causal & same_batch, 0.0, NEG_BIG).astype(jnp.float32)

    s = jnp.einsum('hqd,hkd->hqk', q, k,
                   preferred_element_type=jnp.float32) + bias
    s = s - jnp.max(s, axis=-1, keepdims=True)
    p = jnp.exp(s)
    p = p * pl.reciprocal(jnp.sum(p, axis=-1, keepdims=True), approx=True)
    ctx = jnp.einsum('hqk,hkd->hqd', p, v,
                     preferred_element_type=jnp.float32)       # (H, N, hs)

    # Fold "concat heads + output projection" into one per-head contraction
    # plus a leading-axis sum (no lane-axis concatenate, no separate proj).
    attn = jnp.sum(jnp.einsum('hnd,hde->hne', ctx, wp_ref[...],
                              preferred_element_type=jnp.float32), axis=0)
    attn = attn + bp_ref[...]
    x1 = x + attn                    # residual (dropout = identity)

    # --- ln2 + feed-forward + residual ------------------------------------
    h2 = _layernorm(x1, g2_ref[...], be2_ref[...])
    f = jnp.dot(h2, w1_ref[...], preferred_element_type=jnp.float32) + bf1_ref[...]
    f = jnp.maximum(f, 0.0)
    f = jnp.dot(f, w2_ref[...], preferred_element_type=jnp.float32) + bf2_ref[...]
    o_ref[...] = x1 + f


def attention_block(x, params):
    (g1, be1, wq, wk, wv, wp, bp, g2, be2, w1, bf1, w2, bf2) = params
    B, T, E = x.shape
    H, HS = NUM_HEADS, E // NUM_HEADS

    # Fuse Wq/Wk/Wv into a single head-major weight: wqkv_h[h] = [q_h | k_h | v_h].
    wqkv_h = jnp.stack(
        [jnp.concatenate([wq[:, h * HS:(h + 1) * HS],
                          wk[:, h * HS:(h + 1) * HS],
                          wv[:, h * HS:(h + 1) * HS]], axis=1)
         for h in range(H)], axis=0)                      # (H, E, 3*HS)
    wp_h = wp.reshape(H, HS, E)                           # per-head out-proj slices

    xf = x.reshape(B * T, E)                              # flatten batch into rows
    kernel = functools.partial(attention_block_kernel,
                               batch=B, seq_len=T, num_heads=H)
    vmem = pl.BlockSpec(memory_space=pltpu.MemorySpace.VMEM)
    out = pl.pallas_call(
        kernel,
        out_shape=jax.ShapeDtypeStruct((B * T, E), jnp.float32),
        in_specs=[vmem] * 12,
        out_specs=vmem,
    )(xf, g1, be1, wqkv_h, wp_h, bp, g2, be2, w1, bf1, w2, bf2)
    return out.reshape(B, T, E)


def make_params(key):
    ks = jax.random.split(key, 10)
    E, H = EMBD_SIZE, HIDDEN
    init = lambda k, shp, fan_in: jax.random.uniform(
        k, shp, jnp.float32, -1.0 / (fan_in ** 0.5), 1.0 / (fan_in ** 0.5))
    g1 = jnp.ones((1, E), jnp.float32)
    be1 = jnp.zeros((1, E), jnp.float32)
    wq = init(ks[0], (E, E), E)
    wk = init(ks[1], (E, E), E)
    wv = init(ks[2], (E, E), E)
    wp = init(ks[3], (E, E), E)
    bp = init(ks[4], (1, E), E)
    g2 = jnp.ones((1, E), jnp.float32)
    be2 = jnp.zeros((1, E), jnp.float32)
    w1 = init(ks[5], (E, H), E)
    bf1 = init(ks[6], (1, H), E)
    w2 = init(ks[7], (H, E), H)
    bf2 = init(ks[8], (1, E), H)
    return (g1, be1, wq, wk, wv, wp, bp, g2, be2, w1, bf1, w2, bf2)


def reference(x, params):
    (g1, be1, wq, wk, wv, wp, bp, g2, be2, w1, bf1, w2, bf2) = params
    B, T, E = x.shape
    hs = E // NUM_HEADS

    def ln(v, g, b):
        mu = jnp.mean(v, -1, keepdims=True)
        var = jnp.mean((v - mu) ** 2, -1, keepdims=True)
        return (v - mu) * jax.lax.rsqrt(var + LN_EPS) * g + b

    h = ln(x, g1[0], be1[0])
    q = (h @ wq).reshape(B, T, NUM_HEADS, hs).transpose(0, 2, 1, 3)
    k = (h @ wk).reshape(B, T, NUM_HEADS, hs).transpose(0, 2, 1, 3)
    v = (h @ wv).reshape(B, T, NUM_HEADS, hs).transpose(0, 2, 1, 3)
    s = jnp.einsum("bhqd,bhkd->bhqk", q, k) * hs ** (-0.5)
    mask = jnp.tril(jnp.ones((T, T), bool))
    s = jnp.where(mask, s, -jnp.inf)
    p = jax.nn.softmax(s, axis=-1)
    o = jnp.einsum("bhqk,bhkd->bhqd", p, v).transpose(0, 2, 1, 3).reshape(B, T, E)
    x1 = x + (o @ wp + bp[0])
    h2 = ln(x1, g2[0], be2[0])
    f = jnp.maximum(h2 @ w1 + bf1[0], 0.0) @ w2 + bf2[0]
    return x1 + f


if __name__ == "__main__":
    key = jax.random.PRNGKey(0)
    kx, kp = jax.random.split(key)
    x = jax.random.normal(kx, (BATCH, BLOCK_SIZE, EMBD_SIZE), jnp.float32)
    params = make_params(kp)

    out = jax.block_until_ready(attention_block(x, params))
    ref = reference(x, params)

    assert out.shape == (BATCH, BLOCK_SIZE, EMBD_SIZE)
    # Tolerance loosened slightly: pl.reciprocal(approx=True) in the softmax
    # denominator introduces ~1e-4-level relative error vs. the exact divide.
    assert jnp.allclose(out, ref, atol=2e-3, rtol=2e-3), "mismatch vs JAX reference"
    print("KERNEL_OK")
</pallas_src>

<mosaic_0001>
module attributes {stable_mosaic.version = 11 : i64} {
  func.func @attention_block_kernel(%arg0: memref<16x32xf32, #tpu.memory_space<vmem>>, %arg1: memref<1x32xf32, #tpu.memory_space<vmem>>, %arg2: memref<1x32xf32, #tpu.memory_space<vmem>>, %arg3: memref<4x32x24xf32, #tpu.memory_space<vmem>>, %arg4: memref<4x8x32xf32, #tpu.memory_space<vmem>>, %arg5: memref<1x32xf32, #tpu.memory_space<vmem>>, %arg6: memref<1x32xf32, #tpu.memory_space<vmem>>, %arg7: memref<1x32xf32, #tpu.memory_space<vmem>>, %arg8: memref<32x128xf32, #tpu.memory_space<vmem>>, %arg9: memref<1x128xf32, #tpu.memory_space<vmem>>, %arg10: memref<128x32xf32, #tpu.memory_space<vmem>>, %arg11: memref<1x32xf32, #tpu.memory_space<vmem>>, %arg12: memref<16x32xf32, #tpu.memory_space<vmem>>) attributes {dimension_semantics = [], scalar_prefetch = 0 : i64, scratch_operands = 0 : i64, tpu.core_type = #tpu.core_type<tc>} {
    %c0 = arith.constant 0 : index
    %c0_0 = arith.constant 0 : index
    %0 = vector.load %arg0[%c0, %c0_0] : memref<16x32xf32, #tpu.memory_space<vmem>>, vector<16x32xf32>
    %c0_1 = arith.constant 0 : index
    %c0_2 = arith.constant 0 : index
    %1 = vector.load %arg1[%c0_1, %c0_2] : memref<1x32xf32, #tpu.memory_space<vmem>>, vector<1x32xf32>
    %c0_3 = arith.constant 0 : index
    %c0_4 = arith.constant 0 : index
    %2 = vector.load %arg2[%c0_3, %c0_4] : memref<1x32xf32, #tpu.memory_space<vmem>>, vector<1x32xf32>
    %cst = arith.constant dense<0.000000e+00> : vector<16xf32>
    %3 = vector.multi_reduction <add>, %0, %cst [1] : vector<16x32xf32> to vector<16xf32>
    %4 = vector.shape_cast %3 : vector<16xf32> to vector<16x1xf32>
    %cst_5 = arith.constant 3.200000e+01 : f32
    %5 = vector.broadcast %cst_5 : f32 to vector<16x1xf32>
    %6 = arith.divf %4, %5 : vector<16x1xf32>
    %7 = vector.broadcast %6 : vector<16x1xf32> to vector<16x32xf32>
    %8 = arith.subf %0, %7 : vector<16x32xf32>
    %9 = arith.mulf %8, %8 : vector<16x32xf32>
    %cst_6 = arith.constant dense<0.000000e+00> : vector<16xf32>
    %10 = vector.multi_reduction <add>, %9, %cst_6 [1] : vector<16x32xf32> to vector<16xf32>
    %11 = vector.shape_cast %10 : vector<16xf32> to vector<16x1xf32>
    %cst_7 = arith.constant 3.200000e+01 : f32
    %12 = vector.broadcast %cst_7 : f32 to vector<16x1xf32>
    %13 = arith.divf %11, %12 : vector<16x1xf32>
    %14 = vector.broadcast %6 : vector<16x1xf32> to vector<16x32xf32>
    %15 = arith.subf %0, %14 : vector<16x32xf32>
    %cst_8 = arith.constant 9.99999974E-6 : f32
    %16 = vector.broadcast %cst_8 : f32 to vector<16x1xf32>
    %17 = arith.addf %13, %16 : vector<16x1xf32>
    %18 = math.rsqrt %17 : vector<16x1xf32>
    %19 = vector.broadcast %18 : vector<16x1xf32> to vector<16x32xf32>
    %20 = arith.mulf %15, %19 : vector<16x32xf32>
    %21 = vector.broadcast %1 : vector<1x32xf32> to vector<16x32xf32>
    %22 = arith.mulf %20, %21 : vector<16x32xf32>
    %23 = vector.broadcast %2 : vector<1x32xf32> to vector<16x32xf32>
    %24 = arith.addf %22, %23 : vector<16x32xf32>
    %25 = vector.shape_cast %24 : vector<16x32xf32> to vector<1x16x32xf32>
    %26 = vector.shape_cast %25 : vector<1x16x32xf32> to vector<1x16x32xf32>
    %27 = vector.broadcast %26 : vector<1x16x32xf32> to vector<4x16x32xf32>
    %c0_9 = arith.constant 0 : index
    %c0_10 = arith.constant 0 : index
    %c0_11 = arith.constant 0 : index
    %28 = vector.load %arg3[%c0_9, %c0_10, %c0_11] : memref<4x32x24xf32, #tpu.memory_space<vmem>>, vector<4x32x24xf32>
    "tpu.trace_start"() <{level = 10 : i32, message = "hne,hef->hnf"}> : () -> ()
    %cst_12 = arith.constant dense<0.000000e+00> : vector<4x16x24xf32>
    %29 = tpu.matmul %27, %28, %cst_12 {dimension_numbers = #tpu.dot_dimension_numbers<[2], [1], [1], [2], [0, 0, 0, 1, 1, 2], [0], [0]>} : vector<4x16x32xf32>, vector<4x32x24xf32>, vector<4x16x24xf32> -> vector<4x16x24xf32>
    "tpu.trace_stop"() : () -> ()
    %30 = vector.extract_strided_slice %29 {offsets = [0, 0, 0], sizes = [4, 16, 8], strides = [1, 1, 1]} : vector<4x16x24xf32> to vector<4x16x8xf32>
    %cst_13 = arith.constant 0.353553385 : f32
    %31 = vector.broadcast %cst_13 : f32 to vector<4x16x8xf32>
    %32 = arith.mulf %30, %31 : vector<4x16x8xf32>
    %33 = vector.extract_strided_slice %29 {offsets = [0, 0, 8], sizes = [4, 16, 8], strides = [1, 1, 1]} : vector<4x16x24xf32> to vector<4x16x8xf32>
    %34 = vector.extract_strided_slice %29 {offsets = [0, 0, 16], sizes = [4, 16, 8], strides = [1, 1, 1]} : vector<4x16x24xf32> to vector<4x16x8xf32>
    %35 = tpu.iota {dimensions = array<i32: 0>} : vector<16x16xi32>
    %36 = tpu.iota {dimensions = array<i32: 1>} : vector<16x16xi32>
    %37 = arith.cmpi sle, %36, %35 : vector<16x16xi32>
    %c0_i32 = arith.constant 0 : i32
    %38 = vector.broadcast %c0_i32 : i32 to vector<16x16xi32>
    %39 = arith.cmpi sge, %35, %38 : vector<16x16xi32>
    %c8_i32 = arith.constant 8 : i32
    %40 = vector.broadcast %c8_i32 : i32 to vector<16x16xi32>
    %41 = arith.cmpi slt, %35, %40 : vector<16x16xi32>
    %42 = arith.andi %39, %41 : vector<16x16xi1>
    %c0_i32_14 = arith.constant 0 : i32
    %43 = vector.broadcast %c0_i32_14 : i32 to vector<16x16xi32>
    %44 = arith.cmpi sge, %36, %43 : vector<16x16xi32>
    %45 = arith.andi %42, %44 : vector<16x16xi1>
    %c8_i32_15 = arith.constant 8 : i32
    %46 = vector.broadcast %c8_i32_15 : i32 to vector<16x16xi32>
    %47 = arith.cmpi slt, %36, %46 : vector<16x16xi32>
    %48 = arith.andi %45, %47 : vector<16x16xi1>
    %c8_i32_16 = arith.constant 8 : i32
    %49 = vector.broadcast %c8_i32_16 : i32 to vector<16x16xi32>
    %50 = arith.cmpi sge, %35, %49 : vector<16x16xi32>
    %c16_i32 = arith.constant 16 : i32
    %51 = vector.broadcast %c16_i32 : i32 to vector<16x16xi32>
    %52 = arith.cmpi slt, %35, %51 : vector<16x16xi32>
    %53 = arith.andi %50, %52 : vector<16x16xi1>
    %c8_i32_17 = arith.constant 8 : i32
    %54 = vector.broadcast %c8_i32_17 : i32 to vector<16x16xi32>
    %55 = arith.cmpi sge, %36, %54 : vector<16x16xi32>
    %56 = arith.andi %53, %55 : vector<16x16xi1>
    %c16_i32_18 = arith.constant 16 : i32
    %57 = vector.broadcast %c16_i32_18 : i32 to vector<16x16xi32>
    %58 = arith.cmpi slt, %36, %57 : vector<16x16xi32>
    %59 = arith.andi %56, %58 : vector<16x16xi1>
    %60 = arith.ori %48, %59 : vector<16x16xi1>
    %61 = arith.andi %37, %60 : vector<16x16xi1>
    %cst_19 = arith.constant 0.000000e+00 : f32
    %cst_20 = arith.constant -1.000000e+30 : f32
    %62 = vector.broadcast %cst_19 : f32 to vector<16x16xf32>
    %63 = vector.broadcast %cst_20 : f32 to vector<16x16xf32>
    %64 = arith.select %61, %62, %63 : vector<16x16xi1>, vector<16x16xf32>
    "tpu.trace_start"() <{level = 10 : i32, message = "hqd,hkd->hqk"}> : () -> ()
    %cst_21 = arith.constant dense<0.000000e+00> : vector<4x16x16xf32>
    %65 = tpu.matmul %32, %33, %cst_21 {dimension_numbers = #tpu.dot_dimension_numbers<[2], [2], [1], [1], [0, 0, 0, 1, 1, 1], [0], [0]>} : vector<4x16x8xf32>, vector<4x16x8xf32>, vector<4x16x16xf32> -> vector<4x16x16xf32>
    "tpu.trace_stop"() : () -> ()
    %66 = vector.shape_cast %64 : vector<16x16xf32> to vector<1x16x16xf32>
    %67 = vector.broadcast %66 : vector<1x16x16xf32> to vector<4x16x16xf32>
    %68 = arith.addf %65, %67 : vector<4x16x16xf32>
    %cst_22 = arith.constant dense<0xFF800000> : vector<4x16xf32>
    %69 = vector.multi_reduction <maximumf>, %68, %cst_22 [2] : vector<4x16x16xf32> to vector<4x16xf32>
    %70 = vector.shape_cast %69 : vector<4x16xf32> to vector<4x16x1xf32>
    %71 = vector.broadcast %70 : vector<4x16x1xf32> to vector<4x16x16xf32>
    %72 = arith.subf %68, %71 : vector<4x16x16xf32>
    %73 = math.exp %72 : vector<4x16x16xf32>
    %cst_23 = arith.constant dense<0.000000e+00> : vector<4x16xf32>
    %74 = vector.multi_reduction <add>, %73, %cst_23 [2] : vector<4x16x16xf32> to vector<4x16xf32>
    %75 = vector.shape_cast %74 : vector<4x16xf32> to vector<4x16x1xf32>
    %76 = tpu.reciprocal %75 {approx = true} : vector<4x16x1xf32> -> vector<4x16x1xf32>
    %77 = vector.broadcast %76 : vector<4x16x1xf32> to vector<4x16x16xf32>
    %78 = arith.mulf %73, %77 : vector<4x16x16xf32>
    "tpu.trace_start"() <{level = 10 : i32, message = "hqk,hkd->hqd"}> : () -> ()
    %cst_24 = arith.constant dense<0.000000e+00> : vector<4x16x8xf32>
    %79 = tpu.matmul %78, %34, %cst_24 {dimension_numbers = #tpu.dot_dimension_numbers<[2], [1], [1], [2], [0, 0, 0, 1, 1, 2], [0], [0]>} : vector<4x16x16xf32>, vector<4x16x8xf32>, vector<4x16x8xf32> -> vector<4x16x8xf32>
    "tpu.trace_stop"() : () -> ()
    %c0_25 = arith.constant 0 : index
    %c0_26 = arith.constant 0 : index
    %c0_27 = arith.constant 0 : index
    %80 = vector.load %arg4[%c0_25, %c0_26, %c0_27] : memref<4x8x32xf32, #tpu.memory_space<vmem>>, vector<4x8x32xf32>
    "tpu.trace_start"() <{level = 10 : i32, message = "hnd,hde->hne"}> : () -> ()
    %cst_28 = arith.constant dense<0.000000e+00> : vector<4x16x32xf32>
    %81 = tpu.matmul %79, %80, %cst_28 {dimension_numbers = #tpu.dot_dimension_numbers<[2], [1], [1], [2], [0, 0, 0, 1, 1, 2], [0], [0]>} : vector<4x16x8xf32>, vector<4x8x32xf32>, vector<4x16x32xf32> -> vector<4x16x32xf32>
    "tpu.trace_stop"() : () -> ()
    %cst_29 = arith.constant dense<0.000000e+00> : vector<16x32xf32>
    %82 = vector.multi_reduction <add>, %81, %cst_29 [0] : vector<4x16x32xf32> to vector<16x32xf32>
    %c0_30 = arith.constant 0 : index
    %c0_31 = arith.constant 0 : index
    %83 = vector.load %arg5[%c0_30, %c0_31] : memref<1x32xf32, #tpu.memory_space<vmem>>, vector<1x32xf32>
    %84 = vector.broadcast %83 : vector<1x32xf32> to vector<16x32xf32>
    %85 = arith.addf %82, %84 : vector<16x32xf32>
    %86 = arith.addf %0, %85 : vector<16x32xf32>
    %c0_32 = arith.constant 0 : index
    %c0_33 = arith.constant 0 : index
    %87 = vector.load %arg6[%c0_32, %c0_33] : memref<1x32xf32, #tpu.memory_space<vmem>>, vector<1x32xf32>
    %c0_34 = arith.constant 0 : index
    %c0_35 = arith.constant 0 : index
    %88 = vector.load %arg7[%c0_34, %c0_35] : memref<1x32xf32, #tpu.memory_space<vmem>>, vector<1x32xf32>
    %cst_36 = arith.constant dense<0.000000e+00> : vector<16xf32>
    %89 = vector.multi_reduction <add>, %86, %cst_36 [1] : vector<16x32xf32> to vector<16xf32>
    %90 = vector.shape_cast %89 : vector<16xf32> to vector<16x1xf32>
    %cst_37 = arith.constant 3.200000e+01 : f32
    %91 = vector.broadcast %cst_37 : f32 to vector<16x1xf32>
    %92 = arith.divf %90, %91 : vector<16x1xf32>
    %93 = vector.broadcast %92 : vector<16x1xf32> to vector<16x32xf32>
    %94 = arith.subf %86, %93 : vector<16x32xf32>
    %95 = arith.mulf %94, %94 : vector<16x32xf32>
    %cst_38 = arith.constant dense<0.000000e+00> : vector<16xf32>
    %96 = vector.multi_reduction <add>, %95, %cst_38 [1] : vector<16x32xf32> to vector<16xf32>
    %97 = vector.shape_cast %96 : vector<16xf32> to vector<16x1xf32>
    %cst_39 = arith.constant 3.200000e+01 : f32
    %98 = vector.broadcast %cst_39 : f32 to vector<16x1xf32>
    %99 = arith.divf %97, %98 : vector<16x1xf32>
    %100 = vector.broadcast %92 : vector<16x1xf32> to vector<16x32xf32>
    %101 = arith.subf %86, %100 : vector<16x32xf32>
    %cst_40 = arith.constant 9.99999974E-6 : f32
    %102 = vector.broadcast %cst_40 : f32 to vector<16x1xf32>
    %103 = arith.addf %99, %102 : vector<16x1xf32>
    %104 = math.rsqrt %103 : vector<16x1xf32>
    %105 = vector.broadcast %104 : vector<16x1xf32> to vector<16x32xf32>
    %106 = arith.mulf %101, %105 : vector<16x32xf32>
    %107 = vector.broadcast %87 : vector<1x32xf32> to vector<16x32xf32>
    %108 = arith.mulf %106, %107 : vector<16x32xf32>
    %109 = vector.broadcast %88 : vector<1x32xf32> to vector<16x32xf32>
    %110 = arith.addf %108, %109 : vector<16x32xf32>
    %c0_41 = arith.constant 0 : index
    %c0_42 = arith.constant 0 : index
    %111 = vector.load %arg8[%c0_41, %c0_42] : memref<32x128xf32, #tpu.memory_space<vmem>>, vector<32x128xf32>
    %cst_43 = arith.constant dense<0.000000e+00> : vector<16x128xf32>
    %112 = tpu.matmul %110, %111, %cst_43 {dimension_numbers = #tpu.dot_dimension_numbers<[1], [0], [0], [1], [0, 0, 1, 1], [], []>} : vector<16x32xf32>, vector<32x128xf32>, vector<16x128xf32> -> vector<16x128xf32>
    %c0_44 = arith.constant 0 : index
    %c0_45 = arith.constant 0 : index
    %113 = vector.load %arg9[%c0_44, %c0_45] : memref<1x128xf32, #tpu.memory_space<vmem>>, vector<1x128xf32>
    %114 = vector.broadcast %113 : vector<1x128xf32> to vector<16x128xf32>
    %115 = arith.addf %112, %114 : vector<16x128xf32>
    %cst_46 = arith.constant 0.000000e+00 : f32
    %116 = vector.broadcast %cst_46 : f32 to vector<16x128xf32>
    %117 = arith.maximumf %115, %116 : vector<16x128xf32>
    %c0_47 = arith.constant 0 : index
    %c0_48 = arith.constant 0 : index
    %118 = vector.load %arg10[%c0_47, %c0_48] : memref<128x32xf32, #tpu.memory_space<vmem>>, vector<128x32xf32>
    %cst_49 = arith.constant dense<0.000000e+00> : vector<16x32xf32>
    %119 = tpu.matmul %117, %118, %cst_49 {dimension_numbers = #tpu.dot_dimension_numbers<[1], [0], [0], [1], [0, 0, 1, 1], [], []>} : vector<16x128xf32>, vector<128x32xf32>, vector<16x32xf32> -> vector<16x32xf32>
    %c0_50 = arith.constant 0 : index
    %c0_51 = arith.constant 0 : index
    %120 = vector.load %arg11[%c0_50, %c0_51] : memref<1x32xf32, #tpu.memory_space<vmem>>, vector<1x32xf32>
    %121 = vector.broadcast %120 : vector<1x32xf32> to vector<16x32xf32>
    %122 = arith.addf %119, %121 : vector<16x32xf32>
    %123 = arith.addf %86, %122 : vector<16x32xf32>
    %c0_52 = arith.constant 0 : index
    %c0_53 = arith.constant 0 : index
    %124 = vector.load %arg12[%c0_52, %c0_53] : memref<16x32xf32, #tpu.memory_space<vmem>>, vector<16x32xf32>
    tpu.vector_store %arg12[%c0_52, %c0_53], %123 {strides = array<i32>} : memref<16x32xf32, #tpu.memory_space<vmem>>, vector<16x32xf32>,
    return
  }
}

</mosaic_0001>

<bundles_post_ra>
// kernel: tpu_custom_call.1
= control target key start
LH: loop header
LB: loop body
LE: loop exit
PB: predicated region body
PF: predicated region fallthrough
CT: control target
= control target key end

     0   :  { %vm46_vm0 = vcmask 261120   ;;  %s2634_s0 = inlined_call_operand.vmem [shape: f32[16,32], index: 0, kind: input, shape index: {}]   ;;  %s2635_s1 = inlined_call_operand.vmem [shape: f32[1,32], index: 1, kind: input, shape index: {}]   ;;  %s2636_s2 = inlined_call_operand.vmem [shape: f32[1,32], index: 2, kind: input, shape index: {}]   ;;  %s2637_s3 = inlined_call_operand.vmem [shape: f32[4,32,24], index: 3, kind: input, shape index: {}]   ;;  %s2638_s4 = inlined_call_operand.vmem [shape: f32[4,8,32], index: 4, kind: input, shape index: {}]   ;;  %s2639_s5 = inlined_call_operand.vmem [shape: f32[1,32], index: 5, kind: input, shape index: {}]   ;;  %s2640_s6 = inlined_call_operand.vmem [shape: f32[1,32], index: 6, kind: input, shape index: {}]   ;;  %s2641_s7 = inlined_call_operand.vmem [shape: f32[1,32], index: 7, kind: input, shape index: {}]   ;;  %s2642_s8 = inlined_call_operand.vmem [shape: f32[32,128], index: 8, kind: input, shape index: {}]   ;;  %s2643_s9 = inlined_call_operand.vmem [shape: f32[1,128], index: 9, kind: input, shape index: {}]   ;;  %s2644_s10 = inlined_call_operand.vmem [shape: f32[128,32], index: 10, kind: input, shape index: {}]   ;;  %s2645_s11 = inlined_call_operand.vmem [shape: f32[1,32], index: 11, kind: input, shape index: {}]   ;;  %s2646_s12 = inlined_call_operand.hbm [shape: f32[16,32], index: 12, kind: output, shape index: {}]  }
   0x1   :  { %v2317_v0 = vld [vmem:[%s2634_s0] sm:$0xff]  ;;  %v2322_v1 = vld [vmem:[%s2634_s0 + $0x8] sm:$0xff] }
   0x2   :  { %17 = vsyncpa [#allocation3], 0  ;;  %v47_v2 = vsel %vm46_vm0, %v2317_v0, 0.0  ;;  %v50_v3 = vsel %vm46_vm0, %v2322_v1, 0.0  ;;  %v93_v14 = vld [vmem:[%s2637_s3 + $0x18] sm:$0xff]  ;;  %v92_v16 = vld [vmem:[%s2637_s3 + $0x10] sm:$0xff] }
   0x3   :  { %48 = vadd.xlane.f32.xlu0 %v47_v2  ;;  %v105_v15 = vld [vmem:[%s2637_s3 + $0x78] sm:$0xff]  ;;  %2009 = vmatprep.subr.mxu0 %v93_v14  ;;  %v104_v17 = vld [vmem:[%s2637_s3 + $0x70] sm:$0xff]  ;;  %v91_v18 = vld [vmem:[%s2637_s3 + $0x8] sm:$0xff]  ;;  %s2243_s21 = smov 120   ;;  %vm463_vm1 = vcmask 64512   ;;  %vm822_vm10 = vcmask 130048  }
   0x4   :  { %2042 = vmatprep.subr.mxu1 %v105_v15  ;;  %2010 = vmatpush3.msra.mxu0 %v93_v14  ;;  %v103_v19 = vld [vmem:[%s2637_s3 + $0x68] sm:$0xff]  ;;  %v90_v20 = vld [vmem:[%s2637_s3] sm:$0xff]  ;;  %v97_v22 = vld [vmem:[%s2637_s3 + $0x38] sm:$0xff] }
   0x5   :  { %2043 = vmatpush3.msra.mxu1 %v105_v15  ;;  %2011 = vmatprep.subr.mxu0 %v92_v16  ;;  %v102_v21 = vld [vmem:[%s2637_s3 + $0x60] sm:$0xff]  ;;  %v96_v39 = vld [vmem:[%s2637_s3 + $0x30] sm:$0xff]  ;;  %v95_v40 = vld [vmem:[%s2637_s3 + $0x28] sm:$0xff] }
   0x6   :  { %2044 = vmatprep.subr.mxu1 %v104_v17  ;;  %2012 = vmatpush3.msra.mxu0 %v92_v16  ;;  %v1868_v30 = vld [vmem:[%s2635_s1] ss:$0 sm:$0xff]  ;;  %v101_v42 = vld [vmem:[%s2637_s3 + $0x58] sm:$0xff]  ;;  %v100_v43 = vld [vmem:[%s2637_s3 + $0x50] sm:$0xff] }
   0x7   :  { %51 = vadd.xlane.f32.xlu0 %v50_v3  ;;  %2045 = vmatpush3.msra.mxu1 %v104_v17  ;;  %v1869_v32 = vld [vmem:[%s2636_s2] ss:$0 sm:$0xff]  ;;  %v99_v44 = vld [vmem:[%s2637_s3 + $0x48] sm:$0xff] }
   0x8   :  { %2013 = vmatprep.subr.mxu0 %v91_v18  ;;  %2046 = vmatprep.subr.mxu1 %v103_v19  ;;  %v94_v41 = vld [vmem:[%s2637_s3 + $0x20] sm:$0xff] }
   0x9   :  { %2014 = vmatpush3.msra.mxu0 %v91_v18  ;;  %2047 = vmatpush3.msra.mxu1 %v103_v19  ;;  %v98_v45 = vld [vmem:[%s2637_s3 + $0x40] sm:$0xff]  ;;  %s2245_s3 = smov 112  }
   0xa   :  { %2015 = vmatprep.subr.mxu0 %v90_v20  ;;  %2048 = vmatprep.subr.mxu1 %v102_v21 }
   0xb   :  { %2016 = vmatpush3.msra.mxu0 %v90_v20  ;;  %2049 = vmatpush3.msra.mxu1 %v102_v21 }
   0xc   :  { %2020 = vmatprep.subr.mxu0 %v97_v22 }
  0x8c   :  { %v49_v4 = vpop.xlane.xlu0 %48 }
  0x8d   :  { %v54_v5 = vmul.f32 0.03125, %v49_v4 }
  0x8f   :  { %v56_v6 = vsub.f32 %v2317_v0, %v54_v5 }
  0x90   :  { %v52_v7 = vpop.xlane.xlu0 %51 }
  0x91   :  { %v55_v8 = vmul.f32 0.03125, %v52_v7  ;;  %v58_v9 = vmul.f32 %v56_v6, %v56_v6 }
  0x93   :  { %v57_v10 = vsub.f32 %v2322_v1, %v55_v8  ;;  %v60_v11 = vsel %vm46_vm0, %v58_v9, 0.0  ;;  %v420_v8 = vlaneseq }
  0x94   :  { %61 = vadd.xlane.f32.xlu1 %v60_v11 }
  0x95   :  { %v59_v12 = vmul.f32 %v57_v10, %v57_v10  ;;  %v421_v9 = vshrl.u32 %v420_v8, 7 }
  0x97   :  { %v63_v13 = vsel %vm46_vm0, %v59_v12, 0.0  ;;  %v422_v11 = vadd.s32 8, %v421_v9  ;;  %v2244_v12 = vmov -1e+30  }
  0x98   :  { %64 = vadd.xlane.f32.xlu1 %v63_v13 }
 0x11d   :  { %v62_v23 = vpop.xlane.xlu1 %61 }
 0x11e   :  { %v66_v24 = vmul.f32 0.03125, %v62_v23 }
 0x120   :  { %v68_v25 = vadd.f32 1e-05, %v66_v24 }
 0x121   :  { %v65_v26 = vpop.xlane.xlu1 %64 }
 0x122   :  { %2181 = vrsqrt.f32 %v68_v25  ;;  %v67_v27 = vmul.f32 0.03125, %v65_v26 }
 0x124   :  { %v69_v28 = vadd.f32 1e-05, %v67_v27 }
 0x126   :  { %2183 = vrsqrt.f32 %v69_v28 }
 0x12f   :  { %v2182_v29 = vpop.eup %2181 }
 0x130   :  { %v72_v31 = vmul.f32 %v2182_v29, %v56_v6 }
 0x132   :  { %v80_v33 = vmul.f32 %v1868_v30, %v72_v31 }
 0x133   :  { %v2184_v34 = vpop.eup %2183 }
 0x134   :  { %v88_v35 = vadd.f32 %v1869_v32, %v80_v33  ;;  %v73_v36 = vmul.f32 %v2184_v34, %v57_v10  ;;  %v424_v10 = vand.u32 127, %v420_v8 }
 0x136   :  { %2017 = vmatprep.mubr.msk.f32.mxu0 %vm46_vm0, %v88_v35  ;;  %2050 = vmatprep.mubr.msk.f32.mxu1 %vm46_vm0, %v88_v35  ;;  %v81_v37 = vmul.f32 %v1868_v30, %v73_v36  ;;  %vm445_vm2 = vcmp.ge.s32.totalorder %v424_v10, 8  ;;  %vm448_vm3 = vcmp.lt.s32.totalorder %v424_v10, 16  ;;  %vm426_vm4 = vcmp.le.s32.totalorder %v424_v10, %v422_v11 }
 0x137   :  { %vm450_vm5 = vmand %vm445_vm2, %vm448_vm3  ;;  %vm425_vm6 = vcmp.le.s32.totalorder %v424_v10, %v421_v9  ;;  %vm436_vm7 = vcmp.lt.s32.totalorder %v424_v10, 8 }
 0x138   :  { %v89_v38 = vadd.f32 %v1869_v32, %v81_v37  ;;  %vm454_vm8 = vmand %vm426_vm4, %vm450_vm5 }
 0x139   :  { %vm453_vm9 = vmand %vm425_vm6, %vm436_vm7  ;;  %v456_v13 = vsel %vm454_vm8, 0.0, %v2244_v12 }
 0x13a   :  { %2018 = vmatmul.mubr.msk.f32.vlgmr.msra.gmra.mxu0 %vm46_vm0, %v89_v38  ;;  %2051 = vmatmul.mubr.msk.f32.vlgmr.msra.gmra.mxu1 %vm46_vm0, %v89_v38  ;;  %v455_v15 = vsel %vm453_vm9, 0.0, %v2244_v12 }
 0x13b   :  { %2021 = vmatpush3.msra.mxu0 %v97_v22  ;;  %2028 = vmatprep.mubr.msk.f32.mxu0 %vm46_vm0, %v88_v35 }
 0x13c   :  { %2022 = vmatprep.subr.mxu0 %v96_v39 }
 0x13d   :  { %2023 = vmatpush3.msra.mxu0 %v96_v39 }
 0x13e   :  { %2024 = vmatprep.subr.mxu0 %v95_v40 }
 0x13f   :  { %2025 = vmatpush3.msra.mxu0 %v95_v40 }
 0x140   :  { %2026 = vmatprep.subr.mxu0 %v94_v41 }
 0x141   :  { %2027 = vmatpush3.msra.mxu0 %v94_v41 }
 0x142   :  { %2029 = vmatmul.mubr.msk.f32.vlgmr.msra.gmra.mxu0 %vm46_vm0, %v89_v38  ;;  %2031 = vmatprep.subr.mxu0 %v101_v42 }
 0x143   :  { %2032 = vmatpush3.msra.mxu0 %v101_v42  ;;  %2039 = vmatprep.mubr.msk.f32.mxu0 %vm46_vm0, %v88_v35 }
 0x144   :  { %2033 = vmatprep.subr.mxu0 %v100_v43 }
 0x145   :  { %2034 = vmatpush3.msra.mxu0 %v100_v43 }
 0x146   :  { %2035 = vmatprep.subr.mxu0 %v99_v44 }
 0x147   :  { %2036 = vmatpush3.msra.mxu0 %v99_v44 }
 0x148   :  { %2037 = vmatprep.subr.mxu0 %v98_v45 }
 0x149   :  { %2038 = vmatpush3.msra.mxu0 %v98_v45 }
 0x14a   :  { %2040 = vmatmul.mubr.msk.f32.vlgmr.msra.gmra.mxu0 %vm46_vm0, %v89_v38 }
 0x1fa   :  { %v2394_v46 = vpop.f32.mrf.mxu0  ;;  %v2410_v52 = vpop.f32.mrf.mxu1 }
 0x1fb   :  { %461 = vrot.lane.b32.xlu0 %v2394_v46, %s2243_s21  ;;  %v413_v58 = vmul.f32 0.35355338, %v2394_v46  ;;  %v419_v7 = vmul.f32 0.35355338, %v2410_v52 }
 0x1fc   :  { %v2397_v47 = vpop.f32.mrf.mxu0  ;;  %v2416_v54 = vpop.f32.mrf.mxu1 }
 0x1fd   :  { %v412_v48 = vmul.f32 0.35355338, %v2397_v47  ;;  %459 = vrot.lane.b32.xlu1 %v2397_v47, %s2243_s21  ;;  %v418_v3 = vmul.f32 0.35355338, %v2416_v54 }
 0x1ff   :  { %2057 = vmatprep.mubr.msk.f32.mxu0 %vm463_vm1, %v412_v48 }
 0x202   :  { %v2402_v49 = vpop.f32.mrf.mxu0 }
 0x203   :  { %553 = vrot.lane.b32.xlu1 %v2402_v49, %s2243_s21  ;;  %v415_v62 = vmul.f32 0.35355338, %v2402_v49 }
 0x204   :  { %v2405_v50 = vpop.f32.mrf.mxu0 }
 0x205   :  { %v414_v51 = vmul.f32 0.35355338, %v2405_v50 }
 0x207   :  { %551 = vrot.lane.b32.xlu1 %v2405_v50, %s2243_s21  ;;  %2064 = vmatprep.mubr.msk.f32.mxu1 %vm463_vm1, %v414_v51 }
 0x20a   :  { %v2412_v53 = vpop.f32.mrf.mxu0 }
 0x20b   :  { %735 = vrot.lane.b32.xlu1 %v2410_v52, %s2243_s21  ;;  %644 = vrot.lane.b32.xlu0 %v2412_v53, %s2243_s21  ;;  %v417_v6 = vmul.f32 0.35355338, %v2412_v53 }
 0x20c   :  { %v2418_v55 = vpop.f32.mrf.mxu0 }
 0x20d   :  { %v416_v59 = vmul.f32 0.35355338, %v2418_v55 }
 0x20f   :  { %733 = vrot.lane.b32.xlu1 %v2416_v54, %s2243_s21  ;;  %642 = vrot.lane.b32.xlu0 %v2418_v55, %s2243_s21 }
 0x26d   :  { %v462_v56 = vpop.permute.xlu0 %461 }
 0x26e   :  { %2053 = vmatprep.subr.msk.mxu0 %vm463_vm1, %v462_v56 }
 0x26f   :  { %2054 = vmatpush3.xpose.msk.msra.mxu0 %vm463_vm1, %v462_v56  ;;  %v460_v57 = vpop.permute.xlu1 %459 }
 0x270   :  { %2055 = vmatprep.subr.msk.mxu0 %vm463_vm1, %v460_v57 }
 0x273   :  { %2056 = vmatpush3.xpose.msk.msra.mxu0 %vm463_vm1, %v460_v57 }
 0x275   :  { %v554_v60 = vpop.permute.xlu1 %553 }
 0x276   :  { %2060 = vmatprep.subr.msk.mxu1 %vm463_vm1, %v554_v60  ;;  %2058 = vmatmul.mubr.msk.f32.vlgmr.msra.gmra.mxu0 %vm463_vm1, %v413_v58 }
 0x277   :  { %2061 = vmatpush3.xpose.msk.msra.mxu1 %vm463_vm1, %v554_v60  ;;  %2071 = vmatprep.mubr.msk.f32.mxu0 %vm463_vm1, %v416_v59 }
 0x279   :  { %v552_v61 = vpop.permute.xlu1 %551 }
 0x27a   :  { %2062 = vmatprep.subr.msk.mxu1 %vm463_vm1, %v552_v61 }
 0x27b   :  { %2063 = vmatpush3.xpose.msk.msra.mxu1 %vm463_vm1, %v552_v61 }
 0x27d   :  { %v736_v63 = vpop.permute.xlu1 %735  ;;  %v645_v2 = vpop.permute.xlu0 %644 }
 0x27e   :  { %2065 = vmatmul.mubr.msk.f32.vlgmr.msra.gmra.mxu1 %vm463_vm1, %v415_v62  ;;  %2067 = vmatprep.subr.msk.mxu0 %vm463_vm1, %v645_v2 }
 0x27f   :  { %2074 = vmatprep.subr.msk.mxu1 %vm463_vm1, %v736_v63  ;;  %2068 = vmatpush3.xpose.msk.msra.mxu0 %vm463_vm1, %v645_v2 }
 0x280   :  { %2075 = vmatpush3.xpose.msk.msra.mxu1 %vm463_vm1, %v736_v63  ;;  %2078 = vmatprep.mubr.msk.f32.mxu1 %vm463_vm1, %v418_v3 }
 0x281   :  { %v734_v4 = vpop.permute.xlu1 %733  ;;  %v643_v5 = vpop.permute.xlu0 %642 }
 0x282   :  { %2069 = vmatprep.subr.msk.mxu0 %vm463_vm1, %v643_v5  ;;  %2076 = vmatprep.subr.msk.mxu1 %vm463_vm1, %v734_v4 }
 0x283   :  { %2070 = vmatpush3.xpose.msk.msra.mxu0 %vm463_vm1, %v643_v5 }
 0x284   :  { %2077 = vmatpush3.xpose.msk.msra.mxu1 %vm463_vm1, %v734_v4 }
 0x286   :  { %2072 = vmatmul.mubr.msk.f32.vlgmr.msra.gmra.mxu0 %vm463_vm1, %v417_v6 }
 0x287   :  { %2079 = vmatmul.mubr.msk.f32.vlgmr.msra.gmra.mxu1 %vm463_vm1, %v419_v7 }
 0x336   :  { %v2059_v14 = vpop.f32.mrf.mxu0 }
 0x337   :  { %v546_v16 = vadd.f32 %v2059_v14, %v456_v13 }
 0x338   :  { %v540_v17 = vpop.f32.mrf.mxu0 }
 0x339   :  { %v541_v18 = vadd.f32 %v540_v17, %v455_v15  ;;  %v826_v19 = vsel %vm822_vm10, %v546_v16, -inf }
 0x33a   :  { %827 = vmax.xlane.f32.xlu1 %v826_v19 }
 0x33b   :  { %v823_v20 = vsel %vm822_vm10, %v541_v18, -inf }
 0x33c   :  { %824 = vmax.xlane.f32.xlu0 %v823_v20 }
 0x33e   :  { %v2066_v21 = vpop.f32.mrf.mxu1 }
 0x33f   :  { %v637_v22 = vadd.f32 %v2066_v21, %v456_v13 }
 0x340   :  { %v631_v23 = vpop.f32.mrf.mxu1 }
 0x341   :  { %v632_v24 = vadd.f32 %v631_v23, %v455_v15  ;;  %v832_v25 = vsel %vm822_vm10, %v637_v22, -inf }
 0x342   :  { %833 = vmax.xlane.f32.xlu0 %v832_v25 }
 0x343   :  { %v829_v26 = vsel %vm822_vm10, %v632_v24, -inf }
 0x346   :  { %830 = vmax.xlane.f32.xlu0 %v829_v26  ;;  %v2073_v27 = vpop.f32.mrf.mxu0 }
 0x347   :  { %v2080_v28 = vpop.f32.mrf.mxu1  ;;  %v728_v29 = vadd.f32 %v2073_v27, %v456_v13 }
 0x348   :  { %v722_v30 = vpop.f32.mrf.mxu0  ;;  %v819_v31 = vadd.f32 %v2080_v28, %v456_v13 }
 0x349   :  { %v723_v32 = vadd.f32 %v722_v30, %v455_v15  ;;  %v813_v33 = vpop.f32.mrf.mxu1  ;;  %v838_v34 = vsel %vm822_vm10, %v728_v29, -inf }
 0x34a   :  { %839 = vmax.xlane.f32.xlu1 %v838_v34  ;;  %v814_v35 = vadd.f32 %v813_v33, %v455_v15  ;;  %v844_v37 = vsel %vm822_vm10, %v819_v31, -inf }
 0x34b   :  { %v835_v36 = vsel %vm822_vm10, %v723_v32, -inf }
 0x34c   :  { %836 = vmax.xlane.f32.xlu0 %v835_v36  ;;  %v841_v38 = vsel %vm822_vm10, %v814_v35, -inf }
 0x34e   :  { %845 = vmax.xlane.f32.xlu1 %v844_v37 }
 0x350   :  { %842 = vmax.xlane.f32.xlu0 %v841_v38 }
 0x35f   :  { %911 = vrot.lane.b32.xlu1 %v2397_v47, %s2245_s3 }
 0x363   :  { %1000 = vrot.lane.b32.xlu1 %v2402_v49, %s2245_s3 }
 0x366   :  { %913 = vrot.lane.b32.xlu0 %v2394_v46, %s2245_s3 }
 0x367   :  { %998 = vrot.lane.b32.xlu1 %v2405_v50, %s2245_s3 }
 0x36a   :  { %1087 = vrot.lane.b32.xlu0 %v2412_v53, %s2245_s3 }
 0x36b   :  { %1085 = vrot.lane.b32.xlu1 %v2418_v55, %s2245_s3 }
 0x3c3   :  { %v828_v39 = vpop.xlane.xlu1 %827 }
 0x3c4   :  { %v848_v40 = vsub.f32 %v546_v16, %v828_v39 }
 0x3c5   :  { %v825_v41 = vpop.xlane.xlu0 %824 }
 0x3c6   :  { %v857_v42 = vmul.f32 1.442695, %v848_v40  ;;  %v847_v43 = vsub.f32 %v541_v18, %v825_v41 }
 0x3c8   :  { %2185 = vpow2.f32 %v857_v42  ;;  %v855_v44 = vmul.f32 1.442695, %v847_v43 }
 0x3ca   :  { %2187 = vpow2.f32 %v855_v44 }
 0x3cb   :  { %v834_v45 = vpop.xlane.xlu0 %833 }
 0x3cc   :  { %v850_v47 = vsub.f32 %v637_v22, %v834_v45 }
 0x3ce   :  { %v861_v46 = vmul.f32 1.442695, %v850_v47 }
 0x3cf   :  { %v831_v48 = vpop.xlane.xlu0 %830 }
 0x3d0   :  { %2189 = vpow2.f32 %v861_v46  ;;  %v849_v49 = vsub.f32 %v632_v24, %v831_v48 }
 0x3d2   :  { %v859_v50 = vmul.f32 1.442695, %v849_v49  ;;  %v1259_v49 = vld [vmem:[%s2638_s4] sm:$0xff] }
 0x3d3   :  { %v840_v51 = vpop.xlane.xlu1 %839 }
 0x3d4   :  { %2191 = vpow2.f32 %v859_v50  ;;  %v852_v53 = vsub.f32 %v728_v29, %v840_v51  ;;  %v1260_v50 = vld [vmem:[%s2638_s4 + $0x8] sm:$0xff]  ;;  %v1261_v51 = vld [vmem:[%s2638_s4 + $0x10] sm:$0xff] }
 0x3d5   :  { %v2470_v56 = vpop.eup %2185  ;;  %v837_v55 = vpop.xlane.xlu0 %836 }
 0x3d6   :  { %v865_v57 = vmul.f32 1.442695, %v852_v53  ;;  %v851_v58 = vsub.f32 %v723_v32, %v837_v55  ;;  %v874_v59 = vsel %vm822_vm10, %v2470_v56, 0.0  ;;  %v1262_v53 = vld [vmem:[%s2638_s4 + $0x18] sm:$0xff] }
 0x3d7   :  { %v2188_v60 = vpop.eup %2187  ;;  %v846_v61 = vpop.xlane.xlu1 %845  ;;  %875 = vadd.xlane.f32.xlu1 %v874_v59 }
 0x3d8   :  { %2193 = vpow2.f32 %v865_v57  ;;  %v863_v62 = vmul.f32 1.442695, %v851_v58  ;;  %v854_v63 = vsub.f32 %v819_v31, %v846_v61  ;;  %v871_v2 = vsel %vm822_vm10, %v2188_v60, 0.0 }
 0x3d9   :  { %v843_v3 = vpop.xlane.xlu0 %842  ;;  %872 = vadd.xlane.f32.xlu0 %v871_v2 }
 0x3da   :  { %2195 = vpow2.f32 %v863_v62  ;;  %v869_v4 = vmul.f32 1.442695, %v854_v63  ;;  %v853_v5 = vsub.f32 %v814_v35, %v843_v3 }
 0x3db   :  { %v912_v6 = vpop.permute.xlu1 %911 }
 0x3dc   :  { %2197 = vpow2.f32 %v869_v4  ;;  %v867_v7 = vmul.f32 1.442695, %v853_v5 }
 0x3dd   :  { %v2475_v8 = vpop.eup %2189  ;;  %v914_v9 = vpop.permute.xlu0 %913 }
 0x3de   :  { %2199 = vpow2.f32 %v867_v7  ;;  %2081 = vmatprep.subr.mxu0 %v914_v9  ;;  %v880_v10 = vsel %vm822_vm10, %v2475_v8, 0.0 }
 0x3df   :  { %881 = vadd.xlane.f32.xlu1 %v880_v10  ;;  %2082 = vmatpush3.msra.mxu0 %v914_v9  ;;  %v1001_v12 = vpop.permute.xlu1 %1000 }
 0x3e0   :  { %2083 = vmatprep.subr.mxu0 %v912_v6 }
 0x3e1   :  { %v2192_v11 = vpop.eup %2191  ;;  %2084 = vmatpush3.msra.mxu0 %v912_v6  ;;  %v1088_v24 = vpop.permute.xlu0 %1087 }
 0x3e2   :  { %2088 = vmatprep.subr.mxu0 %v1001_v12  ;;  %v877_v13 = vsel %vm822_vm10, %v2192_v11, 0.0 }
 0x3e3   :  { %878 = vadd.xlane.f32.xlu0 %v877_v13  ;;  %v999_v22 = vpop.permute.xlu1 %998 }
 0x3e5   :  { %v2194_v14 = vpop.eup %2193 }
 0x3e6   :  { %v886_v15 = vsel %vm822_vm10, %v2194_v14, 0.0 }
 0x3e7   :  { %v2196_v16 = vpop.eup %2195  ;;  %887 = vadd.xlane.f32.xlu1 %v886_v15  ;;  %v1086_v23 = vpop.permute.xlu1 %1085 }
 0x3e8   :  { %v883_v17 = vsel %vm822_vm10, %v2196_v16, 0.0 }
 0x3e9   :  { %v2198_v18 = vpop.eup %2197  ;;  %884 = vadd.xlane.f32.xlu0 %v883_v17 }
 0x3ea   :  { %v892_v19 = vsel %vm822_vm10, %v2198_v18, 0.0 }
 0x3eb   :  { %v2200_v20 = vpop.eup %2199  ;;  %893 = vadd.xlane.f32.xlu1 %v892_v19 }
 0x3ec   :  { %v889_v21 = vsel %vm822_vm10, %v2200_v20, 0.0 }
 0x3ed   :  { %890 = vadd.xlane.f32.xlu0 %v889_v21 }
 0x3fc   :  { %1172 = vrot.lane.b32.xlu1 %v2416_v54, %s2245_s3 }
 0x403   :  { %1174 = vrot.lane.b32.xlu0 %v2410_v52, %s2245_s3 }
 0x460   :  { %v876_v25 = vpop.xlane.xlu1 %875 }
 0x461   :  { %2201 = vrcp.f32 %v876_v25 }
 0x462   :  { %v873_v26 = vpop.xlane.xlu0 %872 }
 0x463   :  { %2203 = vrcp.f32 %v873_v26 }
 0x468   :  { %v882_v27 = vpop.xlane.xlu1 %881 }
 0x469   :  { %2205 = vrcp.f32 %v882_v27 }
 0x46c   :  { %v879_v28 = vpop.xlane.xlu0 %878 }
 0x46d   :  { %2207 = vrcp.f32 %v879_v28 }
 0x46e   :  { %v2202_v29 = vpop.eup %2201 }
 0x46f   :  { %v904_v33 = vmul.f32 %v2202_v29, %v2470_v56 }
 0x470   :  { %v2204_v30 = vpop.eup %2203  ;;  %v888_v31 = vpop.xlane.xlu1 %887 }
 0x471   :  { %v903_v32 = vmul.f32 %v2204_v30, %v2188_v60  ;;  %2209 = vrcp.f32 %v888_v31 }
 0x472   :  { %v885_v54 = vpop.xlane.xlu0 %884 }
 0x473   :  { %2211 = vrcp.f32 %v885_v54  ;;  %2085 = vmatprep.mubr.msk.f32.mxu0 %vm822_vm10, %v903_v32 }
 0x474   :  { %v894_v52 = vpop.xlane.xlu1 %893  ;;  %2086 = vmatmul.mubr.msk.f32.vlgmr.msra.gmra.mxu0 %vm822_vm10, %v904_v33 }
 0x475   :  { %2089 = vmatpush3.msra.mxu0 %v1001_v12  ;;  %2213 = vrcp.f32 %v894_v52 }
 0x476   :  { %2090 = vmatprep.subr.mxu0 %v999_v22  ;;  %v891_v34 = vpop.xlane.xlu0 %890  ;;  %v2206_v35 = vpop.eup %2205 }
 0x477   :  { %2215 = vrcp.f32 %v891_v34  ;;  %2091 = vmatpush3.msra.mxu0 %v999_v22  ;;  %v906_v40 = vmul.f32 %v2206_v35, %v2475_v8 }
 0x478   :  { %2095 = vmatprep.subr.mxu0 %v1088_v24  ;;  %v1173_v39 = vpop.permute.xlu1 %1172 }
 0x47a   :  { %v2208_v36 = vpop.eup %2207  ;;  %v1175_v37 = vpop.permute.xlu0 %1174 }
 0x47b   :  { %2102 = vmatprep.subr.mxu1 %v1175_v37  ;;  %v905_v38 = vmul.f32 %v2208_v36, %v2192_v11  ;;  %v1659_v36 = vld [vmem:[%s2642_s8 + $0x18] sm:$0xff] }
 0x47c   :  { %2103 = vmatpush3.msra.mxu1 %v1175_v37  ;;  %v1658_v37 = vld [vmem:[%s2642_s8 + $0x10] sm:$0xff] }
 0x47d   :  { %2092 = vmatprep.mubr.msk.f32.mxu0 %vm822_vm10, %v905_v38  ;;  %2104 = vmatprep.subr.mxu1 %v1173_v39  ;;  %v1657_v38 = vld [vmem:[%s2642_s8 + $0x8] sm:$0xff] }
 0x47e   :  { %2093 = vmatmul.mubr.msk.f32.vlgmr.msra.gmra.mxu0 %vm822_vm10, %v906_v40  ;;  %2105 = vmatpush3.msra.mxu1 %v1173_v39  ;;  %v2210_v41 = vpop.eup %2209  ;;  %v1656_v39 = vld [vmem:[%s2642_s8] sm:$0xff]  ;;  %v1765_v40 = vld [vmem:[%s2644_s10 + $0x78] sm:$0xff] }
 0x47f   :  { %2096 = vmatpush3.msra.mxu0 %v1088_v24  ;;  %v908_v44 = vmul.f32 %v2210_v41, %v2194_v14  ;;  %2114 = vmatprep.subr.mxu1 %v1260_v50  ;;  %v1764_v41 = vld [vmem:[%s2644_s10 + $0x70] sm:$0xff] }
 0x480   :  { %v2212_v42 = vpop.eup %2211  ;;  %2097 = vmatprep.subr.mxu0 %v1086_v23 }
 0x481   :  { %2098 = vmatpush3.msra.mxu0 %v1086_v23  ;;  %v907_v43 = vmul.f32 %v2212_v42, %v2196_v16  ;;  %v1763_v42 = vld [vmem:[%s2644_s10 + $0x68] sm:$0xff] }
 0x482   :  { %v2214_v45 = vpop.eup %2213  ;;  %2109 = vmatprep.subr.mxu0 %v1259_v49 }
 0x483   :  { %2099 = vmatprep.mubr.msk.f32.mxu0 %vm822_vm10, %v907_v43  ;;  %v910_v48 = vmul.f32 %v2214_v45, %v2198_v18  ;;  %v1910_v18 = vld [vmem:[%s2639_s5] ss:$0 sm:$0xff]  ;;  %v1760_v45 = vld [vmem:[%s2644_s10 + $0x50] sm:$0xff] }
 0x484   :  { %v2216_v47 = vpop.eup %2215  ;;  %2100 = vmatmul.mubr.msk.f32.vlgmr.msra.gmra.mxu0 %vm822_vm10, %v908_v44  ;;  %v1762_v43 = vld [vmem:[%s2644_s10 + $0x60] sm:$0xff]  ;;  %v1761_v44 = vld [vmem:[%s2644_s10 + $0x58] sm:$0xff] }
 0x485   :  { %v909_v46 = vmul.f32 %v2216_v47, %v2200_v20  ;;  %2110 = vmatpush3.msra.mxu0 %v1259_v49  ;;  %v1759_v47 = vld [vmem:[%s2644_s10 + $0x48] sm:$0xff]  ;;  %v1756_v49 = vld [vmem:[%s2644_s10 + $0x30] sm:$0xff] }
 0x486   :  { %2119 = vmatprep.subr.mxu0 %v1261_v51 }
 0x487   :  { %2106 = vmatprep.mubr.msk.f32.mxu1 %vm822_vm10, %v909_v46  ;;  %v1758_v46 = vld [vmem:[%s2644_s10 + $0x40] sm:$0xff] }
 0x488   :  { %2107 = vmatmul.mubr.msk.f32.vlgmr.msra.gmra.mxu1 %vm822_vm10, %v910_v48  ;;  %v1757_v48 = vld [vmem:[%s2644_s10 + $0x38] sm:$0xff] }
 0x489   :  { %2115 = vmatpush3.msra.mxu1 %v1260_v50  ;;  %v1755_v50 = vld [vmem:[%s2644_s10 + $0x28] sm:$0xff] }
 0x48a   :  { %2124 = vmatprep.subr.mxu1 %v1262_v53 }
 0x534   :  { %v2087_v56 = vpop.f32.mrf.mxu0 }
 0x536   :  { %v989_v55 = vpop.f32.mrf.mxu0 }
 0x537   :  { %2111 = vmatprep.mubr.msk.f32.mxu0 %vm463_vm1, %v989_v55 }
 0x538   :  { %2112 = vmatmul.mubr.msk.f32.vlgmr.msra.gmra.mxu0 %vm463_vm1, %v2087_v56 }
 0x539   :  { %2120 = vmatpush3.msra.mxu0 %v1261_v51  ;;  %v1754_v51 = vld [vmem:[%s2644_s10 + $0x20] sm:$0xff] }
 0x53a   :  { %2129 = vmatprep.subr.mxu0 %v1659_v36 }
 0x53e   :  { %v2094_v57 = vpop.f32.mrf.mxu0 }
 0x540   :  { %v1076_v58 = vpop.f32.mrf.mxu0 }
 0x541   :  { %2116 = vmatprep.mubr.msk.f32.mxu1 %vm463_vm1, %v1076_v58 }
 0x542   :  { %2117 = vmatmul.mubr.msk.f32.vlgmr.msra.gmra.mxu1 %vm463_vm1, %v2094_v57 }
 0x543   :  { %2125 = vmatpush3.msra.mxu1 %v1262_v53 }
 0x544   :  { %v2101_v59 = vpop.f32.mrf.mxu0  ;;  %2140 = vmatprep.subr.mxu1 %v1765_v40 }
 0x546   :  { %v1163_v60 = vpop.f32.mrf.mxu0 }
 0x547   :  { %2121 = vmatprep.mubr.msk.f32.mxu0 %vm463_vm1, %v1163_v60 }
 0x548   :  { %v2108_v61 = vpop.f32.mrf.mxu1  ;;  %2122 = vmatmul.mubr.msk.f32.vlgmr.msra.gmra.mxu0 %vm463_vm1, %v2101_v59 }
 0x549   :  { %2130 = vmatpush3.msra.mxu0 %v1659_v36 }
 0x54a   :  { %v1250_v62 = vpop.f32.mrf.mxu1  ;;  %2131 = vmatprep.subr.mxu0 %v1658_v37 }
 0x54b   :  { %2126 = vmatprep.mubr.msk.f32.mxu1 %vm463_vm1, %v1250_v62  ;;  %2132 = vmatpush3.msra.mxu0 %v1658_v37 }
 0x54c   :  { %2127 = vmatmul.mubr.msk.f32.vlgmr.msra.gmra.mxu1 %vm463_vm1, %v2108_v61  ;;  %2133 = vmatprep.subr.mxu0 %v1657_v38  ;;  %v1911_v61 = vld [vmem:[%s2640_s6] ss:$0 sm:$0xff] }
 0x54d   :  { %2134 = vmatpush3.msra.mxu0 %v1657_v38  ;;  %2141 = vmatpush3.msra.mxu1 %v1765_v40 }
 0x54e   :  { %2135 = vmatprep.subr.mxu0 %v1656_v39  ;;  %2142 = vmatprep.subr.mxu1 %v1764_v41 }
 0x54f   :  { %2136 = vmatpush3.msra.mxu0 %v1656_v39  ;;  %2143 = vmatpush3.msra.mxu1 %v1764_v41 }
 0x550   :  { %2144 = vmatprep.subr.mxu1 %v1763_v42 }
 0x551   :  { %2145 = vmatpush3.msra.mxu1 %v1763_v42 }
 0x552   :  { %2146 = vmatprep.subr.mxu1 %v1762_v43 }
 0x553   :  { %2147 = vmatpush3.msra.mxu1 %v1762_v43 }
 0x554   :  { %2148 = vmatprep.subr.mxu1 %v1761_v44 }
 0x555   :  { %2149 = vmatpush3.msra.mxu1 %v1761_v44 }
 0x556   :  { %2150 = vmatprep.subr.mxu1 %v1760_v45 }
 0x557   :  { %2151 = vmatpush3.msra.mxu1 %v1760_v45 }
 0x558   :  { %2152 = vmatprep.subr.mxu1 %v1759_v47 }
 0x559   :  { %2153 = vmatpush3.msra.mxu1 %v1759_v47 }
 0x55a   :  { %2154 = vmatprep.subr.mxu1 %v1758_v46 }
 0x55b   :  { %2155 = vmatpush3.msra.mxu1 %v1758_v46 }
 0x55c   :  { %2156 = vmatprep.subr.mxu1 %v1757_v48 }
 0x55d   :  { %2157 = vmatpush3.msra.mxu1 %v1757_v48 }
 0x55e   :  { %2158 = vmatprep.subr.mxu1 %v1756_v49 }
 0x55f   :  { %2159 = vmatpush3.msra.mxu1 %v1756_v49 }
 0x560   :  { %2160 = vmatprep.subr.mxu1 %v1755_v50 }
 0x561   :  { %2161 = vmatpush3.msra.mxu1 %v1755_v50 }
 0x562   :  { %2162 = vmatprep.subr.mxu1 %v1754_v51 }
 0x563   :  { %2163 = vmatpush3.msra.mxu1 %v1754_v51 }
 0x5f8   :  { %v2113_v63 = vpop.f32.mrf.mxu0 }
 0x5f9   :  { %v1594_v7 = vsel %vm46_vm0, %v2113_v63, 0.0  ;;  %v1912_v63 = vld [vmem:[%s2641_s7] ss:$0 sm:$0xff] }
 0x5fa   :  { %v1335_v3 = vpop.f32.mrf.mxu0 }
 0x5fb   :  { %v1587_v12 = vsel %vm46_vm0, %v1335_v3, 0.0 }
 0x602   :  { %v2118_v2 = vpop.f32.mrf.mxu1 }
 0x603   :  { %v1595_v5 = vsel %vm46_vm0, %v2118_v2, 0.0 }
 0x604   :  { %v1416_v4 = vpop.f32.mrf.mxu1  ;;  %v1596_v10 = vadd.f32 %v1595_v5, %v1594_v7 }
 0x605   :  { %v1588_v8 = vsel %vm46_vm0, %v1416_v4, 0.0 }
 0x606   :  { %v1589_v14 = vadd.f32 %v1588_v8, %v1587_v12  ;;  %v1753_v8 = vld [vmem:[%s2644_s10 + $0x18] sm:$0xff]  ;;  %v1913_v12 = vld [vmem:[%s2643_s9] ss:$0 sm:$0xff] }
 0x607   :  { %2164 = vmatprep.subr.mxu1 %v1753_v8 }
 0x608   :  { %v2123_v6 = vpop.f32.mrf.mxu0  ;;  %2165 = vmatpush3.msra.mxu1 %v1753_v8 }
 0x609   :  { %v1597_v9 = vsel %vm46_vm0, %v2123_v6, 0.0 }
 0x60a   :  { %v1497_v11 = vpop.f32.mrf.mxu0  ;;  %v1598_v15 = vadd.f32 %v1597_v9, %v1596_v10  ;;  %v1752_v9 = vld [vmem:[%s2644_s10 + $0x10] sm:$0xff]  ;;  %v1751_v10 = vld [vmem:[%s2644_s10 + $0x8] sm:$0xff] }
 0x60b   :  { %v1590_v13 = vsel %vm46_vm0, %v1497_v11, 0.0  ;;  %2166 = vmatprep.subr.mxu1 %v1752_v9  ;;  %v1750_v11 = vld [vmem:[%s2644_s10] sm:$0xff]  ;;  %s2246_s10 = smov [#allocation2]  }
 0x60c   :  { %v2128_v16 = vpop.f32.mrf.mxu1  ;;  %v1591_v19 = vadd.f32 %v1590_v13, %v1589_v14  ;;  %2167 = vmatpush3.msra.mxu1 %v1752_v9  ;;  %s1857_s27 = sshll.u32 %s2246_s10, 4  ;;  %s1858_s27 = int_to_ptr.vmem [resolvable:$true] %s1857_s27 }
 0x60d   :  { %v1599_v17 = vsel %vm46_vm0, %v2128_v16, 0.0  ;;  %2168 = vmatprep.subr.mxu1 %v1751_v10  ;;  %s2221_s9 = scalar_lea.vmem %s1858_s27, 256  ;;  %p2226_p1 = scmp.lt.s32.totalorder %s1858_s27, %s1858_s27 }
 0x60e   :  { %v1600_v20 = vadd.f32 %v1599_v17, %v1598_v15  ;;  %v1578_v21 = vpop.f32.mrf.mxu1  ;;  %2169 = vmatpush3.msra.mxu1 %v1751_v10  ;;  %p2222_p0 = scmp.ne.s32.totalorder %s1858_s27, %s2221_s9  ;;  %p2227_p2 = scmp.lt.s32.totalorder %s2221_s9, %s2221_s9 }
 0x60f   :  { %v1592_v22 = vsel %vm46_vm0, %v1578_v21, 0.0  ;;  %2170 = vmatprep.subr.mxu1 %v1750_v11 }
 0x610   :  { %v1609_v23 = vadd.f32 %v1910_v18, %v1600_v20  ;;  %v1593_v24 = vadd.f32 %v1592_v22, %v1591_v19  ;;  %2171 = vmatpush3.msra.mxu1 %v1750_v11  ;;  %v1916_v19 = vld [vmem:[%s2645_s11] ss:$0 sm:$0xff]  ;;  %p2228_p3 = por %p2227_p2, %p2226_p1 }
 0x612   :  { %v1608_v25 = vadd.f32 %v1910_v18, %v1593_v24  ;;  %v2530_v26 = vadd.f32 %v1609_v23, %v2322_v1  ;;  %p2229_p4 = pnand %p2228_p3, %p2222_p0 }
 0x614   :  { %v1617_v27 = vsel %vm46_vm0, %v2530_v26, 0.0  ;;  %v2535_v28 = vadd.f32 %v1608_v25, %v2317_v0 }
 0x615   :  { %1618 = vadd.xlane.f32.xlu1 %v1617_v27 }
 0x616   :  { %v1614_v29 = vsel %vm46_vm0, %v2535_v28, 0.0 }
 0x617   :  { %1615 = vadd.xlane.f32.xlu0 %v1614_v29 }
 0x69e   :  { %v1619_v30 = vpop.xlane.xlu1 %1618 }
 0x69f   :  { %v1621_v31 = vmul.f32 0.03125, %v1619_v30 }
 0x6a0   :  { %v1616_v32 = vpop.xlane.xlu0 %1615 }
 0x6a1   :  { %v1620_v54 = vmul.f32 0.03125, %v1616_v32  ;;  %v2540_v33 = vsub.f32 %v2530_v26, %v1621_v31 }
 0x6a3   :  { %v2543_v1 = vsub.f32 %v2535_v28, %v1620_v54  ;;  %v1625_v34 = vmul.f32 %v2540_v33, %v2540_v33 }
 0x6a5   :  { %v1624_v52 = vmul.f32 %v2543_v1, %v2543_v1  ;;  %v1629_v35 = vsel %vm46_vm0, %v1625_v34, 0.0 }
 0x6a7   :  { %v1626_v0 = vsel %vm46_vm0, %v1624_v52, 0.0 }
 0x6a8   :  { %1627 = vadd.xlane.f32.xlu0 %v1626_v0 }
 0x6ac   :  { %1630 = vadd.xlane.f32.xlu0 %v1629_v35 }
 0x731   :  { %v1628_v53 = vpop.xlane.xlu0 %1627 }
 0x732   :  { %v1632_v56 = vmul.f32 0.03125, %v1628_v53 }
 0x734   :  { %v1634_v55 = vadd.f32 1e-05, %v1632_v56 }
 0x735   :  { %v1631_v57 = vpop.xlane.xlu0 %1630 }
 0x736   :  { %2217 = vrsqrt.f32 %v1634_v55  ;;  %v1633_v58 = vmul.f32 0.03125, %v1631_v57 }
 0x738   :  { %v1635_v59 = vadd.f32 1e-05, %v1633_v58 }
 0x73a   :  { %2219 = vrsqrt.f32 %v1635_v59 }
 0x743   :  { %v2218_v60 = vpop.eup %2217 }
 0x744   :  { %v1638_v62 = vmul.f32 %v2218_v60, %v2543_v1 }
 0x746   :  { %v1646_v2 = vmul.f32 %v1911_v61, %v1638_v62 }
 0x747   :  { %v2220_v3 = vpop.eup %2219 }
 0x748   :  { %v1639_v4 = vmul.f32 %v2220_v3, %v2540_v33  ;;  %v1654_v5 = vadd.f32 %v1912_v63, %v1646_v2 }
 0x74a   :  { %v1647_v6 = vmul.f32 %v1911_v61, %v1639_v4  ;;  %2137 = vmatprep.mubr.msk.f32.mxu0 %vm46_vm0, %v1654_v5 }
 0x74c   :  { %v1655_v7 = vadd.f32 %v1912_v63, %v1647_v6 }
 0x74e   :  { %2138 = vmatmul.mubr.msk.f32.vlgmr.msra.gmra.mxu0 %vm46_vm0, %v1655_v7 }
 0x80e   :  { %v2139_v13 = vpop.f32.mrf.mxu0 }
 0x80f   :  { %v1745_v14 = vadd.f32 %v2139_v13, %v1913_v12 }
 0x810   :  { %v1739_v15 = vpop.f32.mrf.mxu0 }
 0x811   :  { %v1740_v16 = vadd.f32 %v1913_v12, %v1739_v15  ;;  %v1749_v18 = vmax.f32 %v1745_v14, 0.0 }
 0x813   :  { %v1748_v17 = vmax.f32 %v1740_v16, 0.0 }
 0x815   :  { %2172 = vmatprep.mubr.f32.mxu1 %v1748_v17 }
 0x816   :  { %2173 = vmatmul.mubr.f32.vlgmr.msra.gmra.mxu1 %v1749_v18 }
 0x8d6   :  { %v2174_v20 = vpop.f32.mrf.mxu1 }
 0x8d7   :  { %v1845_v21 = vadd.f32 %v2174_v20, %v1916_v19 }
 0x8d8   :  { %v1839_v22 = vpop.f32.mrf.mxu1 }
 0x8d9   :  { %v1849_v23 = vadd.f32 %v1845_v21, %v2530_v26  ;;  %v1840_v24 = vadd.f32 %v1916_v19, %v1839_v22 }
 0x8db   :  { %1851 = vst.msk [vmem:[#allocation2 + $0x8] sm:$0xff] %vm46_vm0, %v1849_v23  ;;  %v1848_v25 = vadd.f32 %v1840_v24, %v2535_v28 }
 0x8dd   :  { %1850 = vst.msk [vmem:[#allocation2] sm:$0xff] %vm46_vm0, %v1848_v25 }
 0x8de   :  { %2232 = shalt.err (!%p2229_p4)
}
 0x8df   :  { %s2247_s11 = smov 128   ;;  %s2248_s28 = smov 8  }
 0x8e0   :  { %1863 = dma.vmem_to_hbm [thread:$0]  %s1858_s27, 256, %s2646_s12, [#allocation3], %s2247_s11, %s2247_s11, %s2248_s28  }
 0x8e1   :  { %2241 = dma.done.wait [#allocation3], 256  }
 0x8e2   :  { %2242 = vsyncadd [#allocation3], 4294967040 }
 0x8e3   :  { %1867 = vsyncpa [#allocation3], 1 }

</bundles_post_ra>
